<compile_context>
chip_gen: v5e
topology: v5e:2x2
jax: 0.10.0
libtpu: 0.0.40
codegen_flags: <defaults>
</compile_context>

<pallas_src>
import functools
import math

import jax
import jax.numpy as jnp
from jax import lax
from jax.experimental import pallas as pl
from jax.experimental.pallas import tpu as pltpu

_LANE = 128


def _round_up(n, m):
    return ((n + m - 1) // m) * m


def _vmem_limit_bytes():
    """Per-generation scoped-VMEM limit (larger blocks are the biggest roofline lever)."""
    try:
        cap = int(pltpu.get_tpu_info().vmem_capacity_bytes)
    except Exception:
        cap = 64 << 20
    return max(32 << 20, min(cap * 3 // 4, 96 << 20))


def _pick_block_rows(B, L, C_p, elem_bytes, *, max_bt, target_bytes=4 << 20):
    """Largest Bt with Bt | B, grid >= 2 steps when B >= 2 (megacore), block <= target."""
    best = 1
    for bt in range(1, min(B, max_bt) + 1):
        if B % bt:
            continue
        if B >= 2 and (B // bt) < 2:
            continue
        if bt * L * C_p * elem_bytes > target_bytes:
            continue
        best = bt
    return best


def _gelu(v):
    # exact (erf) GELU, matching torch.nn.functional.gelu default
    return 0.5 * v * (1.0 + lax.erf(v * (1.0 / math.sqrt(2.0))))


def _apply_post(v, scale_ref, shift_ref, mode):
    """Apply the previous layer's (BatchNorm affine +) GELU to a loaded f32 tile."""
    if mode == "none":
        return v
    if mode == "gelu":                       # no BatchNorm
        return _gelu(v)
    if mode == "bn_gelu":                    # conv -> BN -> GELU  (bn_first=True)
        return _gelu(v * scale_ref[...] + shift_ref[...])
    # "gelu_bn":                             # conv -> GELU -> BN  (bn_first=False)
    return _gelu(v) * scale_ref[...] + shift_ref[...]


# ----------------------------- Pallas kernels ------------------------------ #

def _conv_kernel(x_ref, w_ref, b_ref, pscale_ref, pshift_ref,
                 y_ref, s1_ref, s2_ref, xpad_ref,
                 *, K, dilation, lp8, lp, rp, L, Bt, pre_mode, stats_on_gelu, merge_bl):
    """Fused: previous layer's BN+GELU  ->  Conv1d('same')  ->  partial BN stats.

    Block shapes (Bt batch rows per grid step, channels lane-dense):
      x_ref:      (Bt, L, Cin_p)       previous layer's raw conv output (or input)
      w_ref:      (K, Cin_p, Cout_p)   tap-major packed weight, pre-cast to matmul dtype
      b_ref:      (1, Cout_p)          f32
      pscale_ref: (1, Cin_p)           previous layer's BN scale  (unused for
      pshift_ref: (1, Cin_p)           pre_mode in {'none','gelu'})
      y_ref:      (Bt, L, Cout_p)      this layer's raw conv output (pre BN/GELU)
      s1_ref:     (1, 1, Cout_p)       partial per-channel sum for BN stats (f32)
      s2_ref:     (1, 1, Cout_p)       partial per-channel sum of squares (f32)
      xpad_ref:   (Bt, lp8+L+rp, Cin_p) scratch holding the zero halo, matmul dtype,
                                        data rows stored at the sublane-aligned lp8.
    """
    Cin = x_ref.shape[-1]
    Cout = y_ref.shape[-1]
    cdt = xpad_ref.dtype

    # 1) previous layer's BN/GELU fused here; write each example into the zero-haloed
    #    scratch with the main store sublane-aligned at lp8 (unmasked vst).
    for b in range(Bt):
        xin = _apply_post(x_ref[b].astype(jnp.float32), pscale_ref, pshift_ref, pre_mode)
        if lp > 0:
            xpad_ref[b, lp8 - lp:lp8, :] = jnp.zeros((lp, Cin), cdt)
        if rp > 0:
            xpad_ref[b, lp8 + L:lp8 + L + rp, :] = jnp.zeros((rp, Cin), cdt)
        xpad_ref[b, lp8:lp8 + L, :] = xin.astype(cdt)

    base = lp8 - lp
    w_taps = [w_ref[t] for t in range(K)]          # weight block is grid-resident

    if merge_bl:
        # 2a) merged-M path: K accumulating (Bt*L, Cin_p) @ (Cin_p, Cout_p) MXU dots
        #     (better MXU M-fill for short sequences; no im2col concat buffer).
        acc = jnp.zeros((Bt * L, Cout), jnp.float32)
        for t in range(K):
            off = base + t * dilation
            xt = xpad_ref[:, off:off + L, :].reshape(Bt * L, Cin)
            acc = acc + jnp.dot(xt, w_taps[t], preferred_element_type=jnp.float32)
        acc = acc + b_ref[...]
        g = _gelu(acc) if stats_on_gelu else acc
        s1_ref[0] = jnp.sum(g, axis=0, keepdims=True)
        s2_ref[0] = jnp.sum(g * g, axis=0, keepdims=True)
        y_ref[...] = acc.reshape(Bt, L, Cout).astype(y_ref.dtype)
    else:
        # 2b) row-wise path (always safe; exercised when Bt == 1 or L % 16 != 0).
        s1 = jnp.zeros((1, Cout), jnp.float32)
        s2 = jnp.zeros((1, Cout), jnp.float32)
        for b in range(Bt):
            acc = jnp.zeros((L, Cout), jnp.float32)
            for t in range(K):
                off = base + t * dilation
                acc = acc + jnp.dot(xpad_ref[b, off:off + L, :], w_taps[t],
                                    preferred_element_type=jnp.float32)
            acc = acc + b_ref[...]
            g = _gelu(acc) if stats_on_gelu else acc
            s1 = s1 + jnp.sum(g, axis=0, keepdims=True)
            s2 = s2 + jnp.sum(g * g, axis=0, keepdims=True)
            y_ref[b] = acc.astype(y_ref.dtype)
        s1_ref[0] = s1
        s2_ref[0] = s2


def _finalize_pool_kernel(vlen_ref, y_ref, scale_ref, shift_ref, o_ref,
                          *, post_mode, pool, L, Bt):
    """Last layer's BN+GELU fused with masked global pooling.

    vlen_ref: (B,) int32 in SMEM (scalar prefetch) -- per-example valid length.
    y_ref:    (Bt, L, C_p) raw conv output of the last layer.
    o_ref:    (Bt, 1, C_p) if pooled else (Bt, L, C_p), f32.
    """
    g = pl.program_id(0)
    for b in range(Bt):
        vlen = vlen_ref[g * Bt + b]
        yb = _apply_post(y_ref[b].astype(jnp.float32), scale_ref, shift_ref, post_mode)
        valid = lax.broadcasted_iota(jnp.int32, (L, 1), 0) < vlen

        if pool == "avg":
            m = valid.astype(jnp.float32)
            num = jnp.sum(yb * m, axis=0, keepdims=True)
            den = jnp.sum(m, axis=0, keepdims=True)
            # NOTE: 0/0 -> nan for a fully-masked row, matching the PyTorch reference.
            o_ref[b] = (num / den).astype(o_ref.dtype)
        elif pool == "max":
            ym = jnp.where(valid, yb, -jnp.inf)
            o_ref[b] = jnp.max(ym, axis=0, keepdims=True).astype(o_ref.dtype)
        else:
            o_ref[b] = (yb * valid.astype(jnp.float32)).astype(o_ref.dtype)


# ------------------------------ pallas_call wrappers ------------------------ #

def _conv_layer(x, w3d, bias, pscale, pshift, *, K, dilation, pre_mode,
                stats_on_gelu, act_dtype, vmem_limit):
    """x: (B, L, Cin_p) -> (conv_out (B, L, Cout_p), partial_sum, partial_sumsq)."""
    B, L, Cin_p = x.shape
    Cout_p = w3d.shape[-1]
    total_pad = dilation * (K - 1)
    lp = total_pad // 2
    rp = total_pad - lp
    lp8 = _round_up(lp, 8)                  # sublane-aligned data offset in scratch
    Lh = lp8 + L + rp

    merge_ok = (L % 16 == 0)                # safe leading-dim merge for f32/bf16 tiling
    max_bt = 64 if merge_ok else 16
    ebytes = jnp.dtype(act_dtype).itemsize
    Bt = _pick_block_rows(B, L, max(Cin_p, Cout_p), ebytes, max_bt=max_bt)
    G = B // Bt
    merge_bl = merge_ok and Bt > 1

    kernel = functools.partial(
        _conv_kernel, K=K, dilation=dilation, lp8=lp8, lp=lp, rp=rp, L=L, Bt=Bt,
        pre_mode=pre_mode, stats_on_gelu=stats_on_gelu, merge_bl=merge_bl)

    grid_spec = pltpu.PrefetchScalarGridSpec(
        num_scalar_prefetch=0,
        grid=(G,),                          # Bt batch rows per step; weights resident
        in_specs=[
            pl.BlockSpec((Bt, L, Cin_p), lambda g: (g, 0, 0)),
            pl.BlockSpec((K, Cin_p, Cout_p), lambda g: (0, 0, 0)),
            pl.BlockSpec((1, Cout_p), lambda g: (0, 0)),
            pl.BlockSpec((1, Cin_p), lambda g: (0, 0)),
            pl.BlockSpec((1, Cin_p), lambda g: (0, 0)),
        ],
        out_specs=(
            pl.BlockSpec((Bt, L, Cout_p), lambda g: (g, 0, 0)),
            pl.BlockSpec((1, 1, Cout_p), lambda g: (g, 0, 0)),
            pl.BlockSpec((1, 1, Cout_p), lambda g: (g, 0, 0)),
        ),
        scratch_shapes=[pltpu.VMEM((Bt, Lh, Cin_p), w3d.dtype)],
    )
    y, s1, s2 = pl.pallas_call(
        kernel,
        out_shape=(
            jax.ShapeDtypeStruct((B, L, Cout_p), act_dtype),
            jax.ShapeDtypeStruct((G, 1, Cout_p), jnp.float32),
            jax.ShapeDtypeStruct((G, 1, Cout_p), jnp.float32),
        ),
        grid_spec=grid_spec,
        compiler_params=pltpu.CompilerParams(
            dimension_semantics=("parallel",),
            vmem_limit_bytes=vmem_limit),
    )(x, w3d, bias, pscale, pshift)
    return y, s1, s2


def _finalize(y, scale, shift, vlen, *, post_mode, pool, vmem_limit):
    """Apply the last layer's BN+GELU and the masked global pooling."""
    B, L, C_p = y.shape
    Bt = _pick_block_rows(B, L, C_p, jnp.dtype(y.dtype).itemsize, max_bt=16)
    G = B // Bt

    if pool in ("avg", "max"):
        out_shape = jax.ShapeDtypeStruct((B, 1, C_p), jnp.float32)
        out_spec = pl.BlockSpec((Bt, 1, C_p), lambda g, vl: (g, 0, 0))
    else:
        out_shape = jax.ShapeDtypeStruct((B, L, C_p), jnp.float32)
        out_spec = pl.BlockSpec((Bt, L, C_p), lambda g, vl: (g, 0, 0))

    kernel = functools.partial(_finalize_pool_kernel, post_mode=post_mode,
                               pool=pool, L=L, Bt=Bt)
    grid_spec = pltpu.PrefetchScalarGridSpec(
        num_scalar_prefetch=1,              # per-example valid lengths live in SMEM
        grid=(G,),
        in_specs=[
            pl.BlockSpec((Bt, L, C_p), lambda g, vl: (g, 0, 0)),
            pl.BlockSpec((1, C_p), lambda g, vl: (0, 0)),
            pl.BlockSpec((1, C_p), lambda g, vl: (0, 0)),
        ],
        out_specs=out_spec,
    )
    return pl.pallas_call(
        kernel,
        out_shape=out_shape,
        grid_spec=grid_spec,
        compiler_params=pltpu.CompilerParams(
            dimension_semantics=("parallel",),
            vmem_limit_bytes=vmem_limit),
    )(vlen, y, scale, shift)


def _quirk_valid_lengths(padded, batch, length, ch_out):
    """Per-example valid length along L, replicating the PyTorch mask construction.

    TODO(synk): the PyTorch code does mask[i, :, mask.size(1) - padded[i]:] = 0 where
    mask.size(1) is the CHANNEL dim (ch_out), not the length -- almost certainly an
    upstream bug, but replicated here (with python slice semantics) for parity.
    """
    vlen = jnp.full((batch,), length, jnp.int32)
    if padded is None:
        return vlen
    p = jnp.asarray(padded, jnp.int32).reshape(-1)[:batch]
    start = jnp.int32(ch_out) - p
    resolved = jnp.where(start >= 0,
                         jnp.minimum(start, length),
                         jnp.clip(length + start, 0, length)).astype(jnp.int32)
    return vlen.at[:resolved.shape[0]].set(resolved)


class Conv1dBlockPallas:
    """Pallas re-implementation of the PyTorch Conv1dBlock forward pass.

    BatchNorm runs in (PyTorch-default) training mode: batch statistics over (B, L),
    biased variance.  matmul_dtype=bfloat16 (default) gives full MXU throughput on
    v5e/v6e/v7x with f32 accumulation; use jnp.float32 for near-exact numerics.
    act_dtype controls the inter-layer activation storage dtype (HBM round trips);
    it defaults to matmul_dtype.
    """

    def __init__(self, ch_in, ch_out, depth, kernel_sz, global_pool=None,
                 batch_norm=True, bn_first=True, matmul_dtype=jnp.bfloat16,
                 act_dtype=None, key=None):
        self.ch_in = ch_in
        self.ch_out = ch_out
        self.depth = depth
        self.kernel_sz = kernel_sz
        self.global_pool = global_pool
        self.batch_norm = batch_norm
        self.bn_first = bn_first
        self.matmul_dtype = matmul_dtype
        self.act_dtype = matmul_dtype if act_dtype is None else act_dtype
        self.eps = 1e-5
        self.vmem_limit = _vmem_limit_bytes()
        if key is None:
            key = jax.random.PRNGKey(0)

        cout_p = _round_up(ch_out, _LANE)
        self.w3d, self.bias_p, self.gamma_p, self.beta_p = [], [], [], []
        self.w_raw, self.b_raw = [], []
        for i in range(depth):
            cin = ch_in if i == 0 else ch_out
            cin_p = _round_up(cin, _LANE)
            key, kw, kb = jax.random.split(key, 3)
            bound = 1.0 / math.sqrt(cin * kernel_sz)
            w = jax.random.uniform(kw, (ch_out, cin, kernel_sz), jnp.float32,
                                   minval=-bound, maxval=bound)   # PyTorch layout
            b = jax.random.uniform(kb, (ch_out,), jnp.float32,
                                   minval=-bound, maxval=bound)
            self.w_raw.append(w)
            self.b_raw.append(b)
            # lane-dense, tap-major packed weight (K, Cin_p, Cout_p), pre-cast ONCE to
            # the matmul dtype (no per-step in-kernel cast, half the resident VMEM).
            wt = jnp.transpose(w, (2, 1, 0))                      # (K, Cin, Cout)
            wp = jnp.zeros((kernel_sz, cin_p, cout_p), jnp.float32)
            wp = wp.at[:, :cin, :ch_out].set(wt)
            self.w3d.append(wp.astype(matmul_dtype))
            self.bias_p.append(
                jnp.zeros((1, cout_p), jnp.float32).at[0, :ch_out].set(b))
            # BatchNorm1d defaults: weight=1, bias=0 (zeros in padded channels keep
            # those channels identically zero through every layer).
            self.gamma_p.append(jnp.zeros((cout_p,), jnp.float32).at[:ch_out].set(1.0))
            self.beta_p.append(jnp.zeros((cout_p,), jnp.float32))

    def __call__(self, x, padded=None):
        """x: (B, L, ch_in) -> (B, ch_out) if pooled else (B, L, ch_out)."""
        B, L, _ = x.shape
        cin0_p = _round_up(self.ch_in, _LANE)
        y = jnp.pad(x.astype(jnp.float32),
                    ((0, 0), (0, 0), (0, cin0_p - self.ch_in))).astype(self.act_dtype)

        pre_mode = "none"
        pscale = jnp.ones((1, cin0_p), jnp.float32)
        pshift = jnp.zeros((1, cin0_p), jnp.float32)

        for i in range(self.depth):
            dil = 1 if i == 0 else 2
            stats_on_gelu = self.batch_norm and (not self.bn_first)
            y, s1, s2 = _conv_layer(
                y, self.w3d[i], self.bias_p[i], pscale, pshift,
                K=self.kernel_sz, dilation=dil, pre_mode=pre_mode,
                stats_on_gelu=stats_on_gelu, act_dtype=self.act_dtype,
                vmem_limit=self.vmem_limit)

            if self.batch_norm:
                # finalize this layer's batch statistics (tiny per-channel f32 math);
                # the resulting affine + GELU is applied inside the NEXT kernel.
                count = float(B * L)
                mean = jnp.sum(s1, axis=(0, 1)) / count
                var = jnp.maximum(jnp.sum(s2, axis=(0, 1)) / count - mean * mean, 0.0)
                scale = self.gamma_p[i] * lax.rsqrt(var + self.eps)
                shift = self.beta_p[i] - mean * scale
                pscale, pshift = scale.reshape(1, -1), shift.reshape(1, -1)
                pre_mode = "bn_gelu" if self.bn_first else "gelu_bn"
            else:
                cp = y.shape[-1]
                pscale = jnp.ones((1, cp), jnp.float32)
                pshift = jnp.zeros((1, cp), jnp.float32)
                pre_mode = "gelu"

        vlen = _quirk_valid_lengths(padded, B, L, self.ch_out)
        out = _finalize(y, pscale, pshift, vlen,
                        post_mode=pre_mode, pool=self.global_pool,
                        vmem_limit=self.vmem_limit)

        if self.global_pool in ("avg", "max"):
            return out[:, 0, :self.ch_out]
        return out[:, :, :self.ch_out]


# --------------------------- pure-JAX reference ------------------------------ #

def _reference_forward(block, x, padded=None):
    """Pure-JAX (f32) mirror of the PyTorch forward (for validation only)."""
    B, L, _ = x.shape
    y = x.astype(jnp.float32)
    for i in range(block.depth):
        dil = 1 if i == 0 else 2
        K = block.kernel_sz
        total = dil * (K - 1)
        lp = total // 2
        rp = total - lp
        w = block.w_raw[i]                      # (Cout, Cin, K)
        b = block.b_raw[i]
        xp = jnp.pad(y, ((0, 0), (lp, rp), (0, 0)))
        y = b[None, None, :] + sum(
            jnp.einsum("blc,oc->blo", xp[:, t * dil:t * dil + L, :], w[:, :, t])
            for t in range(K))
        gamma = block.gamma_p[i][:block.ch_out]
        beta = block.beta_p[i][:block.ch_out]

        def bn(v):
            m = v.mean(axis=(0, 1))
            var = ((v - m) ** 2).mean(axis=(0, 1))
            return (v - m) * lax.rsqrt(var + block.eps) * gamma + beta

        if block.batch_norm and block.bn_first:
            y = bn(y)
        y = _gelu(y)
        if block.batch_norm and (not block.bn_first):
            y = bn(y)

    vlen = _quirk_valid_lengths(padded, B, L, block.ch_out)
    mask = (jnp.arange(L)[None, :] < vlen[:, None]).astype(jnp.float32)   # (B, L)
    if block.global_pool == "avg":
        return (y * mask[:, :, None]).sum(axis=1) / mask.sum(axis=1, keepdims=True)
    if block.global_pool == "max":
        return jnp.where(mask[:, :, None] > 0, y, -jnp.inf).max(axis=1)
    return y * mask[:, :, None]


# ----------------------------------- main ------------------------------------ #

if __name__ == "__main__":
    key = jax.random.PRNGKey(0)
    kx, k1, k2, k3 = jax.random.split(key, 4)

    B, L, ch_in, ch_out, depth, kernel_sz = 2, 16, 4, 8, 2, 3
    x = jax.random.normal(kx, (B, L, ch_in), jnp.float32)
    padded = [3, 5]

    # 1) masked global average pooling, BN before GELU, bf16 compute -> (B, ch_out)
    blk = Conv1dBlockPallas(ch_in, ch_out, depth, kernel_sz, global_pool="avg",
                            batch_norm=True, bn_first=True, key=k1)
    out = blk(x, padded=padded)
    jax.block_until_ready(out)
    assert out.shape == (B, ch_out)
    ref = _reference_forward(blk, x, padded=padded)
    assert jnp.allclose(out, ref, rtol=5e-2, atol=5e-2)

    # 2) no pooling, BN after GELU, f32 compute (near-exact path) -> (B, L, ch_out)
    blk2 = Conv1dBlockPallas(ch_in, ch_out, depth, kernel_sz, global_pool=None,
                             batch_norm=True, bn_first=False,
                             matmul_dtype=jnp.float32, key=k2)
    out2 = blk2(x)
    jax.block_until_ready(out2)
    assert out2.shape == (B, L, ch_out)
    ref2 = _reference_forward(blk2, x, padded=None)
    assert jnp.allclose(out2, ref2, rtol=2e-3, atol=2e-3)

    # 3) masked global max pooling, no BatchNorm, bf16 compute -> (B, ch_out)
    blk3 = Conv1dBlockPallas(ch_in, ch_out, depth, kernel_sz, global_pool="max",
                             batch_norm=False, bn_first=True, key=k3)
    out3 = blk3(x, padded=padded)
    jax.block_until_ready(out3)
    assert out3.shape == (B, ch_out)
    ref3 = _reference_forward(blk3, x, padded=padded)
    assert jnp.allclose(out3, ref3, rtol=5e-2, atol=5e-2)

    print("KERNEL_OK")
</pallas_src>

<mosaic_0001>
module attributes {stable_mosaic.version = 11 : i64} {
  func.func @_conv_kernel(%arg0: i32, %arg1: memref<1x16x128xbf16, #tpu.memory_space<vmem>>, %arg2: memref<3x128x128xbf16, #tpu.memory_space<vmem>>, %arg3: memref<1x128xf32, #tpu.memory_space<vmem>>, %arg4: memref<1x128xf32, #tpu.memory_space<vmem>>, %arg5: memref<1x128xf32, #tpu.memory_space<vmem>>, %arg6: memref<1x16x128xbf16, #tpu.memory_space<vmem>>, %arg7: memref<1x1x128xf32, #tpu.memory_space<vmem>>, %arg8: memref<1x1x128xf32, #tpu.memory_space<vmem>>, %arg9: memref<1x25x128xbf16, #tpu.memory_space<vmem>>) attributes {dimension_semantics = [#tpu.dimension_semantics<parallel>], iteration_bounds = array<i64: 2>, scalar_prefetch = 0 : i64, scratch_operands = 1 : i64, tpu.core_type = #tpu.core_type<tc>, window_params = [{transform_indices = @transform_0, window_bounds = array<i64: 1, 16, 128>}, {pipeline_mode = #tpu.pipeline_mode<synchronous>, transform_indices = @transform_1, window_bounds = array<i64: 3, 128, 128>}, {pipeline_mode = #tpu.pipeline_mode<synchronous>, transform_indices = @transform_2, window_bounds = array<i64: 1, 128>}, {pipeline_mode = #tpu.pipeline_mode<synchronous>, transform_indices = @transform_3, window_bounds = array<i64: 1, 128>}, {pipeline_mode = #tpu.pipeline_mode<synchronous>, transform_indices = @transform_4, window_bounds = array<i64: 1, 128>}, {transform_indices = @transform_5, window_bounds = array<i64: 1, 16, 128>}, {transform_indices = @transform_6, window_bounds = array<i64: 1, 1, 128>}, {transform_indices = @transform_7, window_bounds = array<i64: 1, 1, 128>}]} {
    %c0 = arith.constant 0 : index
    %c0_0 = arith.constant 0 : index
    %c0_1 = arith.constant 0 : index
    %0 = vector.load %arg1[%c0, %c0_0, %c0_1] : memref<1x16x128xbf16, #tpu.memory_space<vmem>>, vector<1x16x128xbf16>
    %1 = vector.shape_cast %0 : vector<1x16x128xbf16> to vector<16x128xbf16>
    %2 = arith.extf %1 : vector<16x128xbf16> to vector<16x128xf32>
    %cst = arith.constant 0.000000e+00 : bf16
    %3 = vector.broadcast %cst : bf16 to vector<1x128xbf16>
    %c0_2 = arith.constant 0 : index
    %c7 = arith.constant 7 : index
    %c0_3 = arith.constant 0 : index
    %4 = vector.load %arg9[%c0_2, %c7, %c0_3] : memref<1x25x128xbf16, #tpu.memory_space<vmem>>, vector<1x1x128xbf16>
    %5 = vector.shape_cast %4 : vector<1x1x128xbf16> to vector<1x128xbf16>
    %6 = vector.shape_cast %3 : vector<1x128xbf16> to vector<1x1x128xbf16>
    tpu.vector_store %arg9[%c0_2, %c7, %c0_3], %6 {strides = array<i32>} : memref<1x25x128xbf16, #tpu.memory_space<vmem>>, vector<1x1x128xbf16>,
    %cst_4 = arith.constant 0.000000e+00 : bf16
    %7 = vector.broadcast %cst_4 : bf16 to vector<1x128xbf16>
    %c0_5 = arith.constant 0 : index
    %c24 = arith.constant 24 : index
    %c0_6 = arith.constant 0 : index
    %8 = vector.load %arg9[%c0_5, %c24, %c0_6] : memref<1x25x128xbf16, #tpu.memory_space<vmem>>, vector<1x1x128xbf16>
    %9 = vector.shape_cast %8 : vector<1x1x128xbf16> to vector<1x128xbf16>
    %10 = vector.shape_cast %7 : vector<1x128xbf16> to vector<1x1x128xbf16>
    tpu.vector_store %arg9[%c0_5, %c24, %c0_6], %10 {strides = array<i32>} : memref<1x25x128xbf16, #tpu.memory_space<vmem>>, vector<1x1x128xbf16>,
    %11 = arith.truncf %2 : vector<16x128xf32> to vector<16x128xbf16>
    %c0_7 = arith.constant 0 : index
    %c8 = arith.constant 8 : index
    %c0_8 = arith.constant 0 : index
    %12 = vector.load %arg9[%c0_7, %c8, %c0_8] : memref<1x25x128xbf16, #tpu.memory_space<vmem>>, vector<1x16x128xbf16>
    %13 = vector.shape_cast %12 : vector<1x16x128xbf16> to vector<16x128xbf16>
    %14 = vector.shape_cast %11 : vector<16x128xbf16> to vector<1x16x128xbf16>
    tpu.vector_store %arg9[%c0_7, %c8, %c0_8], %14 {strides = array<i32>} : memref<1x25x128xbf16, #tpu.memory_space<vmem>>, vector<1x16x128xbf16>,
    %c0_9 = arith.constant 0 : index
    %c0_10 = arith.constant 0 : index
    %c0_11 = arith.constant 0 : index
    %15 = vector.load %arg2[%c0_9, %c0_10, %c0_11] : memref<3x128x128xbf16, #tpu.memory_space<vmem>>, vector<1x128x128xbf16>
    %16 = vector.shape_cast %15 : vector<1x128x128xbf16> to vector<128x128xbf16>
    %c1 = arith.constant 1 : index
    %c0_12 = arith.constant 0 : index
    %c0_13 = arith.constant 0 : index
    %17 = vector.load %arg2[%c1, %c0_12, %c0_13] : memref<3x128x128xbf16, #tpu.memory_space<vmem>>, vector<1x128x128xbf16>
    %18 = vector.shape_cast %17 : vector<1x128x128xbf16> to vector<128x128xbf16>
    %c2 = arith.constant 2 : index
    %c0_14 = arith.constant 0 : index
    %c0_15 = arith.constant 0 : index
    %19 = vector.load %arg2[%c2, %c0_14, %c0_15] : memref<3x128x128xbf16, #tpu.memory_space<vmem>>, vector<1x128x128xbf16>
    %20 = vector.shape_cast %19 : vector<1x128x128xbf16> to vector<128x128xbf16>
    %cst_16 = arith.constant 0.000000e+00 : f32
    %21 = vector.broadcast %cst_16 : f32 to vector<1x128xf32>
    %cst_17 = arith.constant 0.000000e+00 : f32
    %22 = vector.broadcast %cst_17 : f32 to vector<1x128xf32>
    %cst_18 = arith.constant 0.000000e+00 : f32
    %23 = vector.broadcast %cst_18 : f32 to vector<16x128xf32>
    %c0_19 = arith.constant 0 : index
    %c7_20 = arith.constant 7 : index
    %c0_21 = arith.constant 0 : index
    %24 = vector.load %arg9[%c0_19, %c7_20, %c0_21] : memref<1x25x128xbf16, #tpu.memory_space<vmem>>, vector<1x16x128xbf16>
    %25 = vector.shape_cast %24 : vector<1x16x128xbf16> to vector<16x128xbf16>
    %cst_22 = arith.constant dense<0.000000e+00> : vector<16x128xf32>
    %26 = tpu.matmul %25, %16, %cst_22 {dimension_numbers = #tpu.dot_dimension_numbers<[1], [0], [0], [1], [0, 0, 1, 1], [], []>} : vector<16x128xbf16>, vector<128x128xbf16>, vector<16x128xf32> -> vector<16x128xf32>
    %27 = arith.addf %23, %26 : vector<16x128xf32>
    %c0_23 = arith.constant 0 : index
    %c8_24 = arith.constant 8 : index
    %c0_25 = arith.constant 0 : index
    %28 = vector.load %arg9[%c0_23, %c8_24, %c0_25] : memref<1x25x128xbf16, #tpu.memory_space<vmem>>, vector<1x16x128xbf16>
    %29 = vector.shape_cast %28 : vector<1x16x128xbf16> to vector<16x128xbf16>
    %cst_26 = arith.constant dense<0.000000e+00> : vector<16x128xf32>
    %30 = tpu.matmul %29, %18, %cst_26 {dimension_numbers = #tpu.dot_dimension_numbers<[1], [0], [0], [1], [0, 0, 1, 1], [], []>} : vector<16x128xbf16>, vector<128x128xbf16>, vector<16x128xf32> -> vector<16x128xf32>
    %31 = arith.addf %27, %30 : vector<16x128xf32>
    %c0_27 = arith.constant 0 : index
    %c9 = arith.constant 9 : index
    %c0_28 = arith.constant 0 : index
    %32 = vector.load %arg9[%c0_27, %c9, %c0_28] : memref<1x25x128xbf16, #tpu.memory_space<vmem>>, vector<1x16x128xbf16>
    %33 = vector.shape_cast %32 : vector<1x16x128xbf16> to vector<16x128xbf16>
    %cst_29 = arith.constant dense<0.000000e+00> : vector<16x128xf32>
    %34 = tpu.matmul %33, %20, %cst_29 {dimension_numbers = #tpu.dot_dimension_numbers<[1], [0], [0], [1], [0, 0, 1, 1], [], []>} : vector<16x128xbf16>, vector<128x128xbf16>, vector<16x128xf32> -> vector<16x128xf32>
    %35 = arith.addf %31, %34 : vector<16x128xf32>
    %c0_30 = arith.constant 0 : index
    %c0_31 = arith.constant 0 : index
    %36 = vector.load %arg3[%c0_30, %c0_31] : memref<1x128xf32, #tpu.memory_space<vmem>>, vector<1x128xf32>
    %37 = vector.broadcast %36 : vector<1x128xf32> to vector<16x128xf32>
    %38 = arith.addf %35, %37 : vector<16x128xf32>
    %cst_32 = arith.constant dense<0.000000e+00> : vector<128xf32>
    %39 = vector.multi_reduction <add>, %38, %cst_32 [0] : vector<16x128xf32> to vector<128xf32>
    %40 = vector.shape_cast %39 : vector<128xf32> to vector<1x128xf32>
    %41 = arith.addf %21, %40 : vector<1x128xf32>
    %42 = arith.mulf %38, %38 : vector<16x128xf32>
    %cst_33 = arith.constant dense<0.000000e+00> : vector<128xf32>
    %43 = vector.multi_reduction <add>, %42, %cst_33 [0] : vector<16x128xf32> to vector<128xf32>
    %44 = vector.shape_cast %43 : vector<128xf32> to vector<1x128xf32>
    %45 = arith.addf %22, %44 : vector<1x128xf32>
    %46 = arith.truncf %38 : vector<16x128xf32> to vector<16x128xbf16>
    %c0_34 = arith.constant 0 : index
    %c0_35 = arith.constant 0 : index
    %c0_36 = arith.constant 0 : index
    %47 = vector.load %arg6[%c0_34, %c0_35, %c0_36] : memref<1x16x128xbf16, #tpu.memory_space<vmem>>, vector<1x16x128xbf16>
    %48 = vector.shape_cast %47 : vector<1x16x128xbf16> to vector<16x128xbf16>
    %49 = vector.shape_cast %46 : vector<16x128xbf16> to vector<1x16x128xbf16>
    tpu.vector_store %arg6[%c0_34, %c0_35, %c0_36], %49 {strides = array<i32>} : memref<1x16x128xbf16, #tpu.memory_space<vmem>>, vector<1x16x128xbf16>,
    %c0_37 = arith.constant 0 : index
    %c0_38 = arith.constant 0 : index
    %c0_39 = arith.constant 0 : index
    %50 = vector.load %arg7[%c0_37, %c0_38, %c0_39] : memref<1x1x128xf32, #tpu.memory_space<vmem>>, vector<1x1x128xf32>
    %51 = vector.shape_cast %50 : vector<1x1x128xf32> to vector<1x128xf32>
    %52 = vector.shape_cast %41 : vector<1x128xf32> to vector<1x1x128xf32>
    tpu.vector_store %arg7[%c0_37, %c0_38, %c0_39], %52 {strides = array<i32>} : memref<1x1x128xf32, #tpu.memory_space<vmem>>, vector<1x1x128xf32>,
    %c0_40 = arith.constant 0 : index
    %c0_41 = arith.constant 0 : index
    %c0_42 = arith.constant 0 : index
    %53 = vector.load %arg8[%c0_40, %c0_41, %c0_42] : memref<1x1x128xf32, #tpu.memory_space<vmem>>, vector<1x1x128xf32>
    %54 = vector.shape_cast %53 : vector<1x1x128xf32> to vector<1x128xf32>
    %55 = vector.shape_cast %45 : vector<1x128xf32> to vector<1x1x128xf32>
    tpu.vector_store %arg8[%c0_40, %c0_41, %c0_42], %55 {strides = array<i32>} : memref<1x1x128xf32, #tpu.memory_space<vmem>>, vector<1x1x128xf32>,
    return
  }
  func.func @transform_0(%arg0: i32) -> (i32, i32, i32) {
    %c0_i32 = arith.constant 0 : i32
    %c0_i32_0 = arith.constant 0 : i32
    %c0_i32_1 = arith.constant 0 : i32
    return %arg0, %c0_i32, %c0_i32_0 : i32, i32, i32
  }
  func.func @transform_1(%arg0: i32) -> (i32, i32, i32) {
    %c0_i32 = arith.constant 0 : i32
    %c0_i32_0 = arith.constant 0 : i32
    %c0_i32_1 = arith.constant 0 : i32
    %c0_i32_2 = arith.constant 0 : i32
    return %c0_i32, %c0_i32_0, %c0_i32_1 : i32, i32, i32
  }
  func.func @transform_2(%arg0: i32) -> (i32, i32) {
    %c0_i32 = arith.constant 0 : i32
    %c0_i32_0 = arith.constant 0 : i32
    %c0_i32_1 = arith.constant 0 : i32
    return %c0_i32, %c0_i32_0 : i32, i32
  }
  func.func @transform_3(%arg0: i32) -> (i32, i32) {
    %c0_i32 = arith.constant 0 : i32
    %c0_i32_0 = arith.constant 0 : i32
    %c0_i32_1 = arith.constant 0 : i32
    return %c0_i32, %c0_i32_0 : i32, i32
  }
  func.func @transform_4(%arg0: i32) -> (i32, i32) {
    %c0_i32 = arith.constant 0 : i32
    %c0_i32_0 = arith.constant 0 : i32
    %c0_i32_1 = arith.constant 0 : i32
    return %c0_i32, %c0_i32_0 : i32, i32
  }
  func.func @transform_5(%arg0: i32) -> (i32, i32, i32) {
    %c0_i32 = arith.constant 0 : i32
    %c0_i32_0 = arith.constant 0 : i32
    %c0_i32_1 = arith.constant 0 : i32
    return %arg0, %c0_i32, %c0_i32_0 : i32, i32, i32
  }
  func.func @transform_6(%arg0: i32) -> (i32, i32, i32) {
    %c0_i32 = arith.constant 0 : i32
    %c0_i32_0 = arith.constant 0 : i32
    %c0_i32_1 = arith.constant 0 : i32
    return %arg0, %c0_i32, %c0_i32_0 : i32, i32, i32
  }
  func.func @transform_7(%arg0: i32) -> (i32, i32, i32) {
    %c0_i32 = arith.constant 0 : i32
    %c0_i32_0 = arith.constant 0 : i32
    %c0_i32_1 = arith.constant 0 : i32
    return %arg0, %c0_i32, %c0_i32_0 : i32, i32, i32
  }
}

</mosaic_0001>

<bundles_post_ra>
// kernel: tpu_custom_call.1
= control target key start
LH: loop header
LB: loop body
LE: loop exit
PB: predicated region body
PF: predicated region fallthrough
CT: control target
= control target key end

     0   :  { %13 = vsyncpa [#allocation4], 0  ;;  %s1538_s0 = inlined_call_operand.hbm [shape: bf16[2,16,128], index: 0, kind: input, shape index: {}]   ;;  %s1539_s1 = inlined_call_operand.hbm [shape: bf16[3,128,128], index: 1, kind: input, shape index: {}]   ;;  %s1540_s2 = inlined_call_operand.vmem [shape: f32[1,128], index: 2, kind: input, shape index: {}]   ;;  %s1541_s3 = inlined_call_operand.vmem [shape: f32[1,128], index: 3, kind: input, shape index: {}]   ;;  %s1542_s4 = inlined_call_operand.vmem [shape: f32[1,128], index: 4, kind: input, shape index: {}]   ;;  %s1543_s5 = inlined_call_operand.hbm [shape: bf16[2,16,128], index: 5, kind: output, shape index: {0}]   ;;  %s1544_s6 = inlined_call_operand.hbm [shape: f32[2,1,128], index: 6, kind: output, shape index: {1}]   ;;  %s1545_s7 = inlined_call_operand.hbm [shape: f32[2,1,128], index: 7, kind: output, shape index: {2}]  }
   0x1   :  { %15 = vsyncpa [#allocation4 + $0x1], 0 }
   0x2   :  { %16 = vsyncpa [#allocation7], 0 }
   0x3   :  { %17 = vsyncpa [#allocation5], 0 }
   0x4   :  { %19 = vsyncpa [#allocation5 + $0x1], 0 }
   0x5   :  { %20 = vsyncpa [#allocation10], 0 }
   0x6   :  { %22 = vsyncpa [#allocation10 + $0x1], 0  ;;  %s1322_s3 = smov 0   ;;  %s1324_s24 = smov 0  }
   0x7   :  { %s1326_s4 = smov 0   ;;  %s1328_s25 = smov 0  }
   0x8 LB: > { %s1343_s26 = sadd.s32 4294967295, %s1275_s25   ;;  %s1546_s27 = sadd.s32 4294967294, %s1275_s25   ;;  %s1275_s25 = sphi %s1328_s25, %s1563_s25   ;;  %s1271_s4 = sphi %s1326_s4, %s1562_s4   ;;  %s1267_s24 = sphi %s1324_s24, %s1561_s24   ;;  %s1263_s3 = sphi %s1322_s3, %s1560_s3  }
   0x9   : > { %p48_p0 = scmp.ne.s32.totalorder %s1267_s24, %s1263_s3  ;;  %p49_p1 = scmp.eq.s32.totalorder %s1343_s26, 0 }
   0xa   : > { %p156_p2 = scmp.eq.s32.totalorder %s1343_s26, 1  ;;  %p162_p3 = scmp.eq.s32.totalorder %s1546_s27, 1 }
   0xb   : > { %p1354_p4 = por %p49_p1, %p48_p0  ;;  %p861_p5 = scmp.ge.s32.totalorder %s1275_s25, 1 }
   0xc   : > { %p1359_p6 = por %p162_p3, %p48_p0  ;;  %p221_p7 = scmp.lt.s32.totalorder %s1275_s25, 3 }
   0xd   : > { %s232_s9 = sshll.u32 %s1539_s1, 4  ;;  %s1277_s11 = smov [#allocation6]   ;;  %s233_s9 = int_to_ptr.hbm [resolvable:$true] %s232_s9 }
   0xe   : > { %p1367_p8 = pnand %p861_p5, %p221_p7  ;;  %s234_s12 = sshll.u32 %s1277_s11, 4  ;;  %s235_s12 = int_to_ptr.vmem [resolvable:$true] %s234_s12 }
   0xf   : > { %s1377_s13 = sadd.s32 1, %s1275_s25   ;;  %s1547_s14 = smov 64  }
  0x10   : > { %p1020_p9 = pneg %p1367_p8  ;;  %s1279_s15 = smov 4  }
  0x11   : > { %s32_s16 = ssub.s32 %s1275_s25, %s1377_s13  ;;  %s35_s17 = sadd.s32 1, %s1271_s4 }
  0x12   : > { %p1021_p10 = pnand %p1020_p9, %p49_p1  ;;  %p33_p12 = scmp.eq.s32.totalorder %s32_s16, 0 }
  0x13   : > { %p42_p13 = scmp.ne.s32.totalorder %s1271_s4, %s1267_s24  ;;  %p43_p0 = scmp.eq.s32.totalorder %s1275_s25, 0 }
  0x14   : > { %1023 = dma.hbm_to_vmem [thread:$0]  (!%p1021_p10), %s233_s9, 3072, %s235_s12, [#allocation7], %s1547_s14, %s1547_s14, %s1279_s15  }
  0x15   : > { %s1389_s18 = scalar_select %p33_p12, %s1271_s4, %s35_s17  }
  0x16   : > { %p1393_p3 = por %p156_p2, %p42_p13  ;;  %p1039_p5 = scmp.lt.s32.totalorder %s1275_s25, 2 }
  0x17   : > { %s257_s20 = sand.u32 1, %s1271_s4   ;;  %s976_s21 = sshll.u32 %s1275_s25, 3 }
  0x18   : > { %p44_p7 = por %p43_p0, %p42_p13  ;;  %s864_s22 = sshll.u32 %s257_s20, 3 }
  0x19   : > { %s266_s8 = scalar_lea.hbm %s1538_s0, %s976_s21  ;;  %s261_s11 = scalar_lea.vmem [#allocation3], %s864_s22 }
  0x1a   : > { %s267_s9 = sshll.u32 %s266_s8, 4  ;;  %s269_s12 = sshll.u32 %s261_s11, 4  ;;  %s268_s9 = int_to_ptr.hbm [resolvable:$true] %s267_s9  ;;  %s270_s12 = int_to_ptr.vmem [resolvable:$true] %s269_s12 }
  0x1b   : > { %p1403_p9 = pnand %p1039_p5, %p44_p7  ;;  %s258_s17 = scalar_lea.sflag [#allocation4], %s257_s20 }
  0x1c   : > { %s1110_s27 = sshra.s32 %s268_s9, 4  ;;  %s1117_s22 = scalar_lea.hbm %s1538_s0, 16  ;;  %s1111_s27 = int_to_ptr.hbm [resolvable:$true] %s1110_s27 }
  0x1d   : > { %s1112_s14 = scalar_lea.hbm %s1111_s27, 8  ;;  %p1114_p10 = pneg %p1403_p9 }
  0x1e   : > { %p1113_p2 = scmp.ne.s32.totalorder %s1111_s27, %s1112_s14  ;;  %p1118_p0 = scmp.lt.s32.totalorder %s1111_s27, %s1538_s0 }
  0x1f   : > { %p1119_p5 = scmp.lt.s32.totalorder %s1117_s22, %s1112_s14 }
  0x20   : > { %p1115_p12 = pnand %p1114_p10, %p1113_p2 }
  0x21   : > { %p1120_p7 = por %p1119_p5, %p1118_p0 }
  0x22   : > { %p1116_p13 = pneg %p1115_p12 }
  0x24   : > { %p1121_p11 = pnand %p1120_p7, %p1116_p13 }
  0x26   : > { %1124 = shalt.err (!%p1121_p11)
}
  0x27   : > { %s1553_s20 = smov 64   ;;  %281 = sbr.rel (%p1367_p8) target bundleno = 260 (0x104), region = 40 }
  0x28   : > { %1027 = dma.hbm_to_vmem [thread:$0]  (!%p1403_p9), %s268_s9, 128, %s270_s12, %s258_s17, %s1553_s20, %s1553_s20, %s1279_s15  }
  0x29   : > { %s1423_s11 = sand.u32 (!%p1367_p8), 1, %s1267_s24  }
  0x2a   : > { %s868_s27 = sshll.u32 (!%p1367_p8), %s1423_s11, 3  ;;  %s284_s14 = scalar_lea.sflag (!%p1367_p8), [#allocation4], %s1423_s11 }
  0x2b   : > { %s287_s21 = scalar_lea.vmem (!%p1367_p8), [#allocation3], %s868_s27 }
  0x2c   : > { %1241 = dma.done.wait (%p1354_p4), %s284_s14, 128  }
  0x2d   : > { %1243 = vsyncadd (%p1354_p4), %s284_s14, 4294967168 }
  0x2e   : > { %1245 = dma.done.wait (%p49_p1), [#allocation7], 3072  }
  0x2f   : > { %1247 = vsyncadd (%p49_p1), [#allocation7], 4294964224  ;;  %v992_v0 = vld [vmem:[#allocation6 + $0x78] sm:$0xff]  ;;  %v991_v3 = vld [vmem:[#allocation6 + $0x70] sm:$0xff]  ;;  %vm335_vm0 = vcmask 1043459   ;;  %vm341_vm2 = vcmask 1040384  }
  0x30   : > { %v984_v1 = vld [vmem:[#allocation6 + $0x38] sm:$0xff]  ;;  %456 = vmatpush.bf16.msra.mxu0 %v992_v0  ;;  %v983_v4 = vld [vmem:[#allocation6 + $0x30] sm:$0xff]  ;;  %vm336_vm1 = vsmask.f32 7950  ;;  %vm342_vm3 = vsmask.f32 256 }
  0x31   : > { %v1000_v2 = vld [vmem:[#allocation6 + $0xb8] sm:$0xff]  ;;  %541 = vmatpush.bf16.msra.mxu1 %v984_v1  ;;  %v999_v5 = vld [vmem:[#allocation6 + $0xb0] sm:$0xff]  ;;  %vm1437_vm4 = vmand %vm335_vm0, %vm336_vm1  ;;  %vm474_vm6 = vsmask.f32 4352  ;;  %vm566_vm7 = vsmask.f32 7424 }
  0x32   : > { %628 = vmatpush.bf16.msra.mxu2 %v1000_v2  ;;  %v990_v7 = vld [vmem:[#allocation6 + $0x68] sm:$0xff]  ;;  %vm1441_vm5 = vmand %vm341_vm2, %vm342_vm3  ;;  %v333_v11 = vld [vmem:[%s287_s21] sm:$0xff]   ;;  %s1002_s28 = sshll.u32 %s1343_s26, 3  ;;  %s319_s17 = scalar_lea.vmem [#allocation8], %s868_s27 }
  0x33   : > { %v982_v8 = vld [vmem:[#allocation6 + $0x28] sm:$0xff]  ;;  %v338_v12 = vld [vmem:[#allocation2] sm:$0x8]  ;;  %347 = vst [vmem:[#allocation2 + $0x4] sm:$0xff] %v333_v11   ;;  %v988_v19 = vld [vmem:[#allocation6 + $0x58] sm:$0xff]  ;;  %s694_s16 = scalar_lea.hbm %s1543_s5, %s1002_s28  ;;  %s695_s23 = sshll.u32 %s319_s17, 4  ;;  %s696_s23 = int_to_ptr.vmem [resolvable:$true] %s695_s23 }
  0x34   : > { %457 = vmatpush.bf16.msra.mxu0 %v991_v3  ;;  %v998_v10 = vld [vmem:[#allocation6 + $0xa8] sm:$0xff]  ;;  %v339_v14 = vsel %vm1437_vm4, 0, %v338_v12  ;;  %v989_v16 = vld [vmem:[#allocation6 + $0x60] sm:$0xff]  ;;  %v980_v20 = vld [vmem:[#allocation6 + $0x18] sm:$0xff]  ;;  %s697_s22 = sshll.u32 %s694_s16, 4  ;;  %s675_s30 = scalar_lea.sflag [#allocation5], %s1423_s11  ;;  %s698_s22 = int_to_ptr.hbm [resolvable:$true] %s697_s22 }
  0x35   : > { %542 = vmatpush.bf16.msra.mxu1 %v983_v4  ;;  %v344_v13 = vld [vmem:[#allocation2 + $0xc] sm:$0x1]  ;;  %v981_v17 = vld [vmem:[#allocation6 + $0x20] sm:$0xff]  ;;  %340 = vst [vmem:[#allocation2] sm:$0x8] %v339_v14  ;;  %v996_v21 = vld [vmem:[#allocation6 + $0x98] sm:$0xff] }
  0x36   : > { %629 = vmatpush.bf16.msra.mxu2 %v999_v5  ;;  %v345_v15 = vsel %vm1441_vm5, 0, %v344_v13  ;;  %v997_v18 = vld [vmem:[#allocation6 + $0xa0] sm:$0xff]  ;;  %v987_v27 = vld [vmem:[#allocation6 + $0x50] sm:$0xff]  ;;  %v986_v38 = vld [vmem:[#allocation6 + $0x48] sm:$0xff]  ;;  %s1154_s8 = sshra.s32 %s698_s22, 4  ;;  %s1160_s21 = scalar_lea.hbm %s1543_s5, 16  ;;  %s1155_s8 = int_to_ptr.hbm [resolvable:$true] %s1154_s8 }
  0x37   : > { %346 = vst [vmem:[#allocation2 + $0xc] sm:$0x1] %v345_v15  ;;  %v979_v28 = vld [vmem:[#allocation6 + $0x10] sm:$0xff]  ;;  %v978_v39 = vld [vmem:[#allocation6 + $0x8] sm:$0xff]  ;;  %v985_v50 = vld [vmem:[#allocation6 + $0x40] sm:$0xff]  ;;  %s1156_s20 = scalar_lea.hbm %s1155_s8, 8  ;;  %p1161_p11 = scmp.lt.s32.totalorder %s1155_s8, %s1543_s5 }
  0x38   : > { %458 = vmatpush.bf16.msra.mxu0 %v990_v7  ;;  %v995_v30 = vld [vmem:[#allocation6 + $0x90] sm:$0xff]  ;;  %v994_v43 = vld [vmem:[#allocation6 + $0x88] sm:$0xff]  ;;  %v977_v51 = vld [vmem:[#allocation6] sm:$0xff]  ;;  %p1157_p1 = scmp.ne.s32.totalorder %s1155_s8, %s1156_s20  ;;  %p1162_p9 = scmp.lt.s32.totalorder %s1160_s21, %s1156_s20 }
  0x39   : > { %543 = vmatpush.bf16.msra.mxu1 %v982_v8  ;;  %v993_v54 = vld [vmem:[#allocation6 + $0x80] sm:$0xff] }
  0x3a   : > { %630 = vmatpush.bf16.msra.mxu2 %v998_v10  ;;  %v400_v22 = vld [vmem:[#allocation2 + $0x4] sm:$0xff]   ;;  %v1079_v2 = vld [vmem:[%s1540_s2] ss:$0 sm:$0xff]  ;;  %p1158_p4 = pnand %p1157_p1, %p1393_p3  ;;  %p1163_p2 = por %p1162_p9, %p1161_p11 }
  0x3b   : > { %v1260_v23 = vld [vmem:[#allocation2] sm:$0xf0]   ;;  %v405_v26 = vunpack.c.h.b16 %v400_v22 }
  0x3c   : > { %459 = vmatpush.bf16.msra.mxu0 %v989_v16  ;;  %v1001_v24 = vld [vmem:[#allocation2 + $0x4] sm:$0xff]  ;;  %v1258_v25 = vld [vmem:[#allocation2] sm:$0x8]  ;;  %p1159_p8 = pneg %p1158_p4 }
  0x3d   : > { %544 = vmatpush.bf16.msra.mxu1 %v981_v17  ;;  %v473_v31 = vpack.c.b16 %v405_v26, %v405_v26  ;;  %v570_v33 = vshll.u32 %v1001_v24, 16  ;;  %v1259_v34 = vor.u32 %v1260_v23, %v1258_v25  ;;  %v568_v42 = vshrl.u32 %v1001_v24, 16 }
  0x3e   : > { %631 = vmatpush.bf16.msra.mxu2 %v997_v18  ;;  %v557_v29 = vld [vmem:[#allocation2 + $0xc] sm:$0x1]  ;;  %p1164_p10 = pnand %p1163_p2, %p1159_p8 }
  0x3f   : > { %v563_v32 = vunpack.c.l.b16 %v557_v29  ;;  %v484_v35 = vshrl.u32 %v473_v31, 16  ;;  %v487_v36 = vshll.u32 %v473_v31, 16  ;;  %v476_v40 = vshrl.u32 %v1259_v34, 16 }
  0x40   : > { %460 = vmatpush.bf16.msra.mxu0 %v988_v19  ;;  %v479_v41 = vshll.u32 %v1259_v34, 16  ;;  %v572_v46 = vrot.slane %v570_v33, 1 }
  0x41   : > { %545 = vmatpush.bf16.msra.mxu1 %v980_v20  ;;  %v565_v37 = vpack.c.b16 %v563_v32, %v563_v32  ;;  %v486_v44 = vrot.slane %v484_v35, 3  ;;  %v489_v45 = vrot.slane %v487_v36, 4  ;;  %v478_v48 = vrot.slane %v476_v40, 3 }
  0x42   : > { %632 = vmatpush.bf16.msra.mxu2 %v996_v21  ;;  %v481_v49 = vrot.slane %v479_v41, 4  ;;  %v573_v55 = vor.u32 %v572_v46, %v568_v42 }
  0x43   : > { %v575_v47 = vshll.u32 %v565_v37, 16  ;;  %v490_v53 = vor.u32 %v489_v45, %v486_v44 }
  0x44   : > { %461 = vmatpush.bf16.msra.mxu0 %v987_v27  ;;  %v482_v52 = vor.u32 %v481_v49, %v478_v48 }
  0x45   : > { %546 = vmatpush.bf16.msra.mxu1 %v979_v28  ;;  %v577_v56 = vrot.slane %v575_v47, 1 }
  0x46   : > { %633 = vmatpush.bf16.msra.mxu2 %v995_v30  ;;  %v491_v57 = vsel %vm474_vm6, %v482_v52, %v490_v53 }
  0x47   : > { %v578_v58 = vsel %vm566_vm7, %v573_v55, %v577_v56 }
  0x48   : > { %462 = vmatpush.bf16.msra.mxu0 %v986_v38 }
  0x49   : > { %547 = vmatpush.bf16.msra.mxu1 %v978_v39 }
  0x4a   : > { %634 = vmatpush.bf16.msra.mxu2 %v994_v43 }
  0x4c   : > { %463 = vmatpush.bf16.msra.mxu0 %v985_v50 }
  0x4d   : > { %548 = vmatpush.bf16.msra.mxu1 %v977_v51 }
  0x4e   : > { %635 = vmatpush.bf16.msra.mxu2 %v993_v54 }
  0x4f   : > { %464 = vmatmul.bf16.vlgmr.msra.gmra.mxu0 %v400_v22 }
  0x50   : > { %549 = vmatmul.bf16.vlgmr.msra.gmra.mxu1 %v491_v57 }
  0x51   : > { %636 = vmatmul.bf16.vlgmr.msra.gmra.mxu2 %v578_v58 }
  0xcc   : > { %v465_v59 = vpop.f32.mrf.mxu0 }
  0xcd   : > { %v550_v60 = vpop.f32.mrf.mxu1 }
  0xce   : > { %v551_v62 = vadd.f32 %v550_v60, %v465_v59 }
  0xd4   : > { %v637_v61 = vpop.f32.mrf.mxu2  ;;  %v467_v63 = vpop.f32.mrf.mxu0 }
  0xd5   : > { %v552_v0 = vpop.f32.mrf.mxu1  ;;  %v642_v1 = vadd.f32 %v637_v61, %v551_v62 }
  0xd6   : > { %v553_v3 = vadd.f32 %v552_v0, %v467_v63 }
  0xd7   : > { %v648_v5 = vadd.f32 %v1079_v2, %v642_v1 }
  0xd9   : > { %v658_v8 = vmul.f32 %v648_v5, %v648_v5 }
  0xdc   : > { %v639_v4 = vpop.f32.mrf.mxu2 }
  0xdd   : > { %v643_v6 = vadd.f32 %v639_v4, %v553_v3 }
  0xdf   : > { %v649_v7 = vadd.f32 %v1079_v2, %v643_v6 }
  0xe1   : > { %v650_v9 = vadd.f32 %v649_v7, %v648_v5  ;;  %v659_v10 = vmul.f32 %v649_v7, %v649_v7  ;;  %v1006_v11 = vpack.c.bf16 %v649_v7, %v648_v5 }
  0xe3   : > { %v651_v12 = vrot.slane %v650_v9, 4  ;;  %v660_v13 = vadd.f32 %v659_v10, %v658_v8  ;;  %1007 = vst [vmem:[%s319_s17] sm:$0xff] %v1006_v11  }
  0xe4   : > { %1167 = shalt.err (!%p1164_p10)
}
  0xe5   : > { %s1280_s15 = smov 64   ;;  %s1281_s9 = smov 4   ;;  %v652_v14 = vadd.f32 %v651_v12, %v650_v9  ;;  %v661_v15 = vrot.slane %v660_v13, 4 }
  0xe6   : > { %1014 = dma.vmem_to_hbm [thread:$0]  (%p1393_p3), %s696_s23, 128, %s698_s22, %s675_s30, %s1280_s15, %s1280_s15, %s1281_s9  }
  0xe7   : > { %v653_v16 = vrot.slane %v652_v14, 2  ;;  %v662_v17 = vadd.f32 %v661_v15, %v660_v13  ;;  %s709_s17 = scalar_lea.hbm %s1544_s6, %s1343_s26  ;;  %s679_s8 = sand.u32 1, %s1343_s26  }
  0xe8   : > { %s722_s14 = scalar_lea.hbm %s1545_s7, %s1343_s26  ;;  %s325_s21 = scalar_lea.vmem [#allocation9], %s1423_s11 }
  0xe9   : > { %v654_v18 = vadd.f32 %v653_v16, %v652_v14  ;;  %v663_v19 = vrot.slane %v662_v17, 2  ;;  %s1479_s28 = sshll.u32 %s325_s21, 4  ;;  %s1481_s23 = sshll.u32 %s709_s17, 4  ;;  %s712_s28 = int_to_ptr.vmem [resolvable:$true] %s1479_s28  ;;  %s714_s23 = int_to_ptr.hbm [resolvable:$true] %s1481_s23 }
  0xea   : > { %s331_s22 = scalar_lea.vmem [#allocation11], %s1423_s11  ;;  %s1486_s10 = sshll.u32 %s722_s14, 4  ;;  %s727_s10 = int_to_ptr.hbm [resolvable:$true] %s1486_s10 }
  0xeb   : > { %v664_v20 = vadd.f32 %v663_v19, %v662_v17  ;;  %v655_v21 = vrot.slane %v654_v18, 1  ;;  %s1484_s30 = sshll.u32 %s331_s22, 4  ;;  %s680_s26 = scalar_lea.sflag [#allocation10], %s679_s8  ;;  %s725_s30 = int_to_ptr.vmem [resolvable:$true] %s1484_s30 }
  0xec   : > { %s1182_s15 = sshra.s32 %s714_s23, 4  ;;  %s1188_s16 = scalar_lea.hbm %s1544_s6, 2  ;;  %s1183_s15 = int_to_ptr.hbm [resolvable:$true] %s1182_s15 }
  0xed   : > { %v656_v22 = vadd.f32 %v655_v21, %v654_v18  ;;  %v665_v23 = vrot.slane %v664_v20, 1  ;;  %s1184_s9 = scalar_lea.hbm %s1183_s15, 1  ;;  %p1189_p5 = scmp.lt.s32.totalorder %s1183_s15, %s1544_s6 }
  0xee   : > { %p1185_p12 = scmp.ne.s32.totalorder %s1183_s15, %s1184_s9  ;;  %p1190_p7 = scmp.lt.s32.totalorder %s1188_s16, %s1184_s9 }
  0xef   : > { %672 = vst [vmem:[%s325_s21] sm:$0x1] %v656_v22  ;;  %v666_v24 = vadd.f32 %v665_v23, %v664_v20 }
  0xf0   : > { %p1186_p13 = pnand %p1185_p12, %p1393_p3  ;;  %p1191_p1 = por %p1190_p7, %p1189_p5 }
  0xf2   : > { %p1187_p0 = pneg %p1186_p13 }
  0xf4   : > { %p1192_p4 = pnand %p1191_p1, %p1187_p0 }
  0xf6   : > { %1195 = shalt.err (!%p1192_p4)
}
  0xf7   : > { %1015 = dma.vmem_to_hbm [thread:$0]  (%p1393_p3), %s712_s28, 16, %s714_s23, %s680_s26   ;;  %673 = vst [vmem:[%s331_s22] sm:$0x1] %v666_v24 }
  0xf8   : > { %s1210_s8 = sshra.s32 %s727_s10, 4  ;;  %s1216_s15 = scalar_lea.hbm %s1545_s7, 2  ;;  %s1211_s8 = int_to_ptr.hbm [resolvable:$true] %s1210_s8 }
  0xf9   : > { %s1212_s27 = scalar_lea.hbm %s1211_s8, 1  ;;  %p1217_p2 = scmp.lt.s32.totalorder %s1211_s8, %s1545_s7 }
  0xfa   : > { %p1213_p8 = scmp.ne.s32.totalorder %s1211_s8, %s1212_s27  ;;  %p1218_p10 = scmp.lt.s32.totalorder %s1216_s15, %s1212_s27 }
  0xfc   : > { %p1214_p11 = pnand %p1213_p8, %p1393_p3  ;;  %p1219_p12 = por %p1218_p10, %p1217_p2 }
  0xfe   : > { %p1215_p9 = pneg %p1214_p11 }
 0x100   : > { %p1220_p13 = pnand %p1219_p12, %p1215_p9 }
 0x102   : > { %1223 = shalt.err (!%p1220_p13)
}
 0x103   : > { %1016 = dma.vmem_to_hbm [thread:$0]  (%p1393_p3), %s725_s30, 16, %s727_s10, %s680_s26  }
 0x104 PF: > { %s738_s28 = sand.u32 1, %s1263_s3   ;;  %p1558_p0 = scmp.ge.s32.totalorder %s1275_s25, 2 }
 0x105   : > { %s739_s23 = scalar_lea.sflag [#allocation5], %s738_s28 }
 0x106   : > { %p1029_p5 = pnand %p1558_p0, %p1359_p6 }
 0x108   : > { %p1030_p7 = pneg %p1029_p5 }
 0x10a   : > { %1249 = dma.done.wait (%p1030_p7), %s739_s23, 128  }
 0x10b   : > { %1251 = vsyncadd (%p1030_p7), %s739_s23, 4294967168  ;;  %s1559_s22 = sadd.s32 4294967294, %s1275_s25  }
 0x10c   : > { %s748_s19 = sand.u32 1, %s1559_s22  }
 0x10d   : > { %s749_s12 = scalar_lea.sflag [#allocation10], %s748_s19 }
 0x10e   : > { %1253 = dma.done.wait (%p1030_p7), %s749_s12, 32  }
 0x10f   : > { %1255 = vsyncadd (%p1030_p7), %s749_s12, 4294967264  ;;  %p25_p3 = scmp.ge.s32.totalorder %s1377_s13, 4   ;;  %s1560_s3 = smov %s1267_s24 }
 0x110   : > { %s1561_s24 = smov %s1271_s4  ;;  %s1562_s4 = smov %s1389_s18 }
 0x111   : > { %s1563_s25 = smov %s1377_s13  ;;  %27 = sbr.rel (!%p25_p3) target bundleno = 8 (0x8), region = 123 }
 0x116   :  { %763 = vsyncpa [#allocation4], 1 }
 0x117   :  { %765 = vsyncpa [#allocation4 + $0x1], 1 }
 0x118   :  { %766 = vsyncpa [#allocation7], 1 }
 0x119   :  { %767 = vsyncpa [#allocation5], 1 }
 0x11a   :  { %769 = vsyncpa [#allocation5 + $0x1], 1 }
 0x11b   :  { %770 = vsyncpa [#allocation10], 1 }
 0x11c   :  { %772 = vsyncpa [#allocation10 + $0x1], 1 }

</bundles_post_ra>
